<compile_context>
chip_gen: v5e
topology: v5e:2x2
jax: 0.10.0
libtpu: 0.0.40
codegen_flags: <defaults>
</compile_context>

<pallas_src>
import jax
import jax.numpy as jnp
from jax import lax
from jax.experimental import pallas as pl
from jax.experimental.pallas import tpu as pltpu


# ---------------------------------------------------------------------------
# Hardware-aware budgets
# ---------------------------------------------------------------------------

def _tpu_vmem_budget_bytes() -> int:
    """Usable scoped-VMEM budget (bytes) with headroom for compiler scratch."""
    cap = 64 * 1024 * 1024           # conservative default: v7x per-TensorCore
    try:
        info = pltpu.get_tpu_info()
        c = int(getattr(info, "vmem_capacity_bytes", 0) or 0)
        if c > 0:
            cap = c                  # 128 MiB on v5e/v6e, 64 MiB on v7x
    except Exception:
        pass
    return (cap * 3) // 4            # leave ~25% headroom, never the full cap


# ---------------------------------------------------------------------------
# Fused adaILN kernel (stats + mix + affine + ReLU/residual in one pass)
# ---------------------------------------------------------------------------

def _make_fused_adailn_kernel(hw: int, num_c: int, eps: float,
                              relu: bool, has_residual: bool):
    n_in = float(hw)
    n_ln = float(num_c * hw)

    def compute(x_ref, p_ref, o_ref, res_ref=None):
        x = x_ref[0].astype(jnp.float32)                  # (C, HW)
        p = p_ref[0]                                      # (C, 4) f32
        a_in = p[:, 0:1]                                  # gamma * rho0   (C,1)
        a_ln = p[:, 1:2]                                  # gamma * rho1   (C,1)
        bias = p[:, 2:3]                                  # beta           (C,1)

        # -- two-pass IN statistics on the VMEM-resident slab (accurate) ----
        in_mean = jnp.sum(x, axis=1, keepdims=True) * (1.0 / n_in)      # (C,1)
        xc = x - in_mean
        in_ss = jnp.sum(xc * xc, axis=1, keepdims=True)                 # (C,1)
        in_var = in_ss * (1.0 / (n_in - 1.0))             # unbiased (torch.var)

        # -- LN statistics derived exactly from per-channel stats ------------
        ln_mean = jnp.sum(in_mean, axis=0, keepdims=True) * (1.0 / num_c)  # (1,1)
        dm = in_mean - ln_mean                                             # (C,1)
        ln_ss = (jnp.sum(in_ss, axis=0, keepdims=True)
                 + n_in * jnp.sum(dm * dm, axis=0, keepdims=True))         # (1,1)
        ln_var = ln_ss * (1.0 / (n_ln - 1.0))

        inv_in = lax.rsqrt(in_var + eps)                  # (C,1)
        inv_ln = lax.rsqrt(ln_var + eps)                  # (1,1)

        # Fold rho mix + gamma/beta into per-channel scale/shift.
        k = a_in * inv_in + a_ln * inv_ln                                  # (C,1)
        shift = bias - a_in * inv_in * in_mean - a_ln * inv_ln * ln_mean   # (C,1)

        y = x * k + shift
        if res_ref is not None:
            y = y + res_ref[0].astype(jnp.float32)
        if relu:
            y = jnp.maximum(y, 0.0)
        o_ref[0] = y.astype(o_ref.dtype)

    if has_residual:
        def kernel(x_ref, p_ref, r_ref, o_ref):
            compute(x_ref, p_ref, o_ref, r_ref)
    else:
        def kernel(x_ref, p_ref, o_ref):
            compute(x_ref, p_ref, o_ref)
    return kernel


# ---------------------------------------------------------------------------
# Tiled fallback kernels (only used when a per-sample slab does not fit VMEM)
# ---------------------------------------------------------------------------

def _stats_tiled_kernel(x_ref, s_ref, acc_ref):
    """Accumulate per-channel sum / sum-of-squares in an f32 VMEM scratch and
    write the packed (C, 2) result once at the last HW tile (no output RMW)."""
    t = pl.program_id(1)
    x = x_ref[0].astype(jnp.float32)                      # (C, tHW)
    s1 = jnp.sum(x, axis=1, keepdims=True)                # (C, 1)
    s2 = jnp.sum(x * x, axis=1, keepdims=True)            # (C, 1)
    part = jnp.concatenate([s1, s2], axis=1)              # (C, 2)

    @pl.when(t == 0)
    def _():
        acc_ref[...] = part

    @pl.when(t > 0)
    def _():
        acc_ref[...] += part

    @pl.when(t == pl.num_programs(1) - 1)
    def _():
        s_ref[0] = acc_ref[...]                           # single packed store


def _make_apply_kernel(relu: bool, has_residual: bool):
    """Fused elementwise apply: out = x * k + c (+ residual) (+ ReLU)."""
    if has_residual:
        def kernel(x_ref, r_ref, kc_ref, o_ref):
            kc = kc_ref[0]                                             # (C, 2)
            y = x_ref[0].astype(jnp.float32) * kc[:, 0:1] + kc[:, 1:2]
            y = y + r_ref[0].astype(jnp.float32)
            if relu:
                y = jnp.maximum(y, 0.0)
            o_ref[0] = y.astype(o_ref.dtype)
    else:
        def kernel(x_ref, kc_ref, o_ref):
            kc = kc_ref[0]
            y = x_ref[0].astype(jnp.float32) * kc[:, 0:1] + kc[:, 1:2]
            if relu:
                y = jnp.maximum(y, 0.0)
            o_ref[0] = y.astype(o_ref.dtype)
    return kernel


def _pick_hw_tile(hw: int, c: int, itemsize: int, max_tile_bytes: int) -> int:
    """Largest multiple-of-128 divisor of hw whose (C, tile) block fits budget."""
    if c * hw * itemsize <= max_tile_bytes:
        return hw
    if hw % 128 != 0:
        return hw                      # full-extent block is always legal
    best = 128                         # NOTE: may exceed budget for huge C;
    t = 128                            # harmless, VMEM limit is raised below.
    while t <= hw:
        if hw % t == 0 and c * t * itemsize <= max_tile_bytes:
            best = t
        t += 128
    return best


# ---------------------------------------------------------------------------
# adaILN via Pallas (using_bn=False branch)
# ---------------------------------------------------------------------------

def ada_iln_pallas(x, rho, gamma, beta, eps=1e-5, *, relu=False, residual=None):
    """adaILN forward with optional fused ReLU / residual add.

    x:        (B, C, H, W)   f32 or bf16
    rho:      (1, C, 2)      raw parameter (softmax over last axis applied here)
    gamma:    (B, C)         per-sample affine scale
    beta:     (B, C)         per-sample affine shift
    residual: optional (B, C, H, W), added after the affine (fused)
    """
    B, C, H, W = x.shape
    HW = H * W
    x_flat = x.reshape(B, C, HW)
    res_flat = residual.reshape(B, C, HW) if residual is not None else None

    itemsize = jnp.dtype(x.dtype).itemsize
    budget = _tpu_vmem_budget_bytes()

    # Fold the (static) rho softmax and the per-sample gamma into small
    # per-(sample, channel) parameters computed once in the wrapper.
    rho_sm = jax.nn.softmax(rho.astype(jnp.float32), axis=2)   # (1, C, 2)
    rho0 = rho_sm[0, :, 0][None, :]                            # (1, C)
    rho1 = rho_sm[0, :, 1][None, :]                            # (1, C)
    g = gamma.astype(jnp.float32)                              # (B, C)
    b_ = beta.astype(jnp.float32)                              # (B, C)

    n_big = 3 if residual is not None else 2                   # x (+res) + out
    slab_io = C * HW * itemsize
    slab_f32 = C * HW * 4
    # double-buffered I/O slabs + f32 temporaries the compiler materializes.
    fused_need = 2 * n_big * slab_io + 4 * slab_f32 + (2 << 20)

    # ---------------- fused single-pass path (preferred) --------------------
    if fused_need <= budget:
        params = jnp.stack([g * rho0, g * rho1, b_, jnp.zeros_like(b_)],
                           axis=-1)                            # (B, C, 4) f32
        kernel = _make_fused_adailn_kernel(HW, C, eps, relu, residual is not None)

        big_spec = pl.BlockSpec((1, C, HW), lambda b: (b, 0, 0))
        p_spec = pl.BlockSpec((1, C, 4), lambda b: (b, 0, 0))

        operands = [x_flat, params]
        in_specs = [big_spec, p_spec]
        if residual is not None:
            operands.append(res_flat)
            in_specs.append(big_spec)

        vmem_limit = int(min(budget, max(fused_need, 32 * 1024 * 1024)))

        # TODO(synk): with B=1 on v7x the single 'parallel' B axis leaves one
        # TensorCore idle; LN stats couple channels so a clean per-core split
        # needs a partial-stats variant.
        out_flat = pl.pallas_call(
            kernel,
            out_shape=jax.ShapeDtypeStruct((B, C, HW), x.dtype),
            grid_spec=pltpu.PrefetchScalarGridSpec(
                num_scalar_prefetch=0,
                grid=(B,),
                in_specs=in_specs,
                out_specs=big_spec,
            ),
            compiler_params=pltpu.CompilerParams(
                dimension_semantics=("parallel",),
                vmem_limit_bytes=vmem_limit,
            ),
        )(*operands)
        return out_flat.reshape(B, C, H, W)

    # ---------------- tiled two-pass fallback (very large feature maps) -----
    # TODO(synk): fallback uses single-pass s2 - n*mean^2 variance (clamped);
    # less accurate than the fused two-pass path for very large HW.
    max_tile_bytes = min(16 * 1024 * 1024, budget // 10)
    t_hw = _pick_hw_tile(HW, C, max(itemsize, 4), max_tile_bytes)
    n_t = HW // t_hw

    tile_io = C * t_hw * itemsize
    tile_f32 = C * t_hw * 4
    tiled_need = 2 * n_big * tile_io + 4 * tile_f32 + (4 << 20)
    vmem_limit = int(min(budget, max(tiled_need, 32 * 1024 * 1024)))

    # pass 1: per-channel sums
    stats = pl.pallas_call(
        _stats_tiled_kernel,
        out_shape=jax.ShapeDtypeStruct((B, C, 2), jnp.float32),
        grid_spec=pltpu.PrefetchScalarGridSpec(
            num_scalar_prefetch=0,
            grid=(B, n_t),
            in_specs=[pl.BlockSpec((1, C, t_hw), lambda b, t: (b, 0, t))],
            out_specs=pl.BlockSpec((1, C, 2), lambda b, t: (b, 0, 0)),
            scratch_shapes=[pltpu.VMEM((C, 2), jnp.float32)],
        ),
        compiler_params=pltpu.CompilerParams(
            dimension_semantics=("parallel", "arbitrary"),
            vmem_limit_bytes=vmem_limit,
        ),
    )(x_flat)

    s1 = stats[:, :, 0]                                    # (B, C)
    s2 = stats[:, :, 1]                                    # (B, C)

    # glue: fold IN/LN norm + rho mix + gamma/beta into (k, c)  [O(B*C)]
    n_in = float(HW)
    in_mean = s1 / n_in
    in_var = jnp.maximum((s2 - n_in * in_mean * in_mean) / (n_in - 1.0), 0.0)

    n_ln = float(C * HW)
    s1_all = jnp.sum(s1, axis=1, keepdims=True)            # (B, 1)
    s2_all = jnp.sum(s2, axis=1, keepdims=True)            # (B, 1)
    ln_mean = s1_all / n_ln
    ln_var = jnp.maximum((s2_all - n_ln * ln_mean * ln_mean) / (n_ln - 1.0), 0.0)

    inv_in = lax.rsqrt(in_var + eps)                       # (B, C)
    inv_ln = lax.rsqrt(ln_var + eps)                       # (B, 1)

    a_in = rho0 * inv_in
    a_ln = rho1 * inv_ln
    k = g * (a_in + a_ln)
    c_shift = b_ - g * (a_in * in_mean + a_ln * ln_mean)
    kc = jnp.stack([k, c_shift], axis=-1)                  # (B, C, 2)

    # pass 2: fused elementwise apply
    kernel = _make_apply_kernel(relu, residual is not None)
    big_spec = pl.BlockSpec((1, C, t_hw), lambda b, t: (b, 0, t))
    kc_spec = pl.BlockSpec((1, C, 2), lambda b, t: (b, 0, 0))

    if residual is not None:
        operands = (x_flat, res_flat, kc)
        in_specs = [big_spec, big_spec, kc_spec]
    else:
        operands = (x_flat, kc)
        in_specs = [big_spec, kc_spec]

    out_flat = pl.pallas_call(
        kernel,
        out_shape=jax.ShapeDtypeStruct((B, C, HW), x.dtype),
        grid_spec=pltpu.PrefetchScalarGridSpec(
            num_scalar_prefetch=0,
            grid=(B, n_t),
            in_specs=in_specs,
            out_specs=big_spec,
        ),
        compiler_params=pltpu.CompilerParams(
            dimension_semantics=("parallel", "parallel"),
            vmem_limit_bytes=vmem_limit,
        ),
    )(*operands)

    return out_flat.reshape(B, C, H, W)


# ---------------------------------------------------------------------------
# ResnetAdaILNBlock forward
# ---------------------------------------------------------------------------

def _reflect_pad1(x):
    return jnp.pad(x, ((0, 0), (0, 0), (1, 1), (1, 1)), mode="reflect")


def _conv3x3(x, w, b):
    # TODO(synk): reflection-pad + 3x3 conv go through XLA's native conv
    # (already MXU-backed); an NHWC layout for the whole block would avoid
    # layout transposes around these convs but is left to a follow-up.
    y = lax.conv_general_dilated(
        x, w, window_strides=(1, 1), padding="VALID",
        dimension_numbers=("NCHW", "OIHW", "NCHW"))
    if b is not None:
        y = y + b[None, :, None, None]
    return y


@jax.jit
def resnet_ada_iln_block(x, gamma, beta, w1, b1, rho1, w2, b2, rho2):
    """ResnetAdaILNBlock.forward(x, gamma, beta)."""
    h = _conv3x3(_reflect_pad1(x), w1, b1)
    h = ada_iln_pallas(h, rho1, gamma, beta, relu=True)      # norm1 + ReLU fused
    h = _conv3x3(_reflect_pad1(h), w2, b2)
    out = ada_iln_pallas(h, rho2, gamma, beta, residual=x)   # norm2 + skip fused
    return out


# ---------------------------------------------------------------------------
# Pure-JAX reference (mirrors the PyTorch module)
# ---------------------------------------------------------------------------

def _ada_iln_reference(x, rho, gamma, beta, eps=1e-5):
    xf = x.astype(jnp.float32)
    in_mean = jnp.mean(xf, axis=(2, 3), keepdims=True)
    in_var = jnp.var(xf, axis=(2, 3), keepdims=True, ddof=1)
    out_in = (xf - in_mean) / jnp.sqrt(in_var + eps)
    ln_mean = jnp.mean(xf, axis=(1, 2, 3), keepdims=True)
    ln_var = jnp.var(xf, axis=(1, 2, 3), keepdims=True, ddof=1)
    out_ln = (xf - ln_mean) / jnp.sqrt(ln_var + eps)
    r = jax.nn.softmax(rho.astype(jnp.float32), axis=2)
    r0 = r[:, :, 0].reshape(1, -1, 1, 1)
    r1 = r[:, :, 1].reshape(1, -1, 1, 1)
    out = r0 * out_in + r1 * out_ln
    out = out * gamma[:, :, None, None] + beta[:, :, None, None]
    return out.astype(x.dtype)


def resnet_ada_iln_block_reference(x, gamma, beta, w1, b1, rho1, w2, b2, rho2):
    h = _conv3x3(_reflect_pad1(x), w1, b1)
    h = _ada_iln_reference(h, rho1, gamma, beta)
    h = jnp.maximum(h, 0.0)
    h = _conv3x3(_reflect_pad1(h), w2, b2)
    h = _ada_iln_reference(h, rho2, gamma, beta)
    return h + x


# ---------------------------------------------------------------------------

if __name__ == "__main__":
    B, C, H, W = 2, 4, 16, 16

    key = jax.random.PRNGKey(0)
    kx, kg, kb, kw1, kb1, kw2, kb2 = jax.random.split(key, 7)

    x = jax.random.normal(kx, (B, C, H, W), jnp.float32)
    # adaILN gamma/beta are per-sample (B, C) outputs of an MLP in the model.
    gamma = 1.0 + 0.1 * jax.random.normal(kg, (B, C), jnp.float32)
    beta = 0.1 * jax.random.normal(kb, (B, C), jnp.float32)

    w1 = 0.1 * jax.random.normal(kw1, (C, C, 3, 3), jnp.float32)
    b1 = 0.1 * jax.random.normal(kb1, (C,), jnp.float32)
    w2 = 0.1 * jax.random.normal(kw2, (C, C, 3, 3), jnp.float32)
    b2 = 0.1 * jax.random.normal(kb2, (C,), jnp.float32)

    # adaILN rho init (using_bn=False): rho[:, :, 0]=3.2, rho[:, :, 1]=1.0
    rho_init = jnp.concatenate(
        [jnp.full((1, C, 1), 3.2, jnp.float32),
         jnp.full((1, C, 1), 1.0, jnp.float32)], axis=2)
    rho1 = rho_init
    rho2 = rho_init

    out = resnet_ada_iln_block(x, gamma, beta, w1, b1, rho1, w2, b2, rho2)
    out = jax.block_until_ready(out)

    ref = resnet_ada_iln_block_reference(x, gamma, beta, w1, b1, rho1, w2, b2, rho2)
    assert out.shape == (B, C, H, W)
    assert jnp.allclose(out, ref, atol=2e-4, rtol=2e-4), "mismatch vs reference"

    print("KERNEL_OK")
</pallas_src>

<mosaic_0001>
module attributes {stable_mosaic.version = 11 : i64} {
  func.func @kernel(%arg0: i32, %arg1: memref<1x4x256xf32, #tpu.memory_space<vmem>>, %arg2: memref<1x4x4xf32, #tpu.memory_space<vmem>>, %arg3: memref<1x4x256xf32, #tpu.memory_space<vmem>>) attributes {dimension_semantics = [#tpu.dimension_semantics<parallel>], iteration_bounds = array<i64: 2>, scalar_prefetch = 0 : i64, scratch_operands = 0 : i64, tpu.core_type = #tpu.core_type<tc>, window_params = [{transform_indices = @transform_0, window_bounds = array<i64: 1, 4, 256>}, {transform_indices = @transform_1, window_bounds = array<i64: 1, 4, 4>}, {transform_indices = @transform_2, window_bounds = array<i64: 1, 4, 256>}]} {
    %c0 = arith.constant 0 : index
    %c0_0 = arith.constant 0 : index
    %c0_1 = arith.constant 0 : index
    %0 = vector.load %arg1[%c0, %c0_0, %c0_1] : memref<1x4x256xf32, #tpu.memory_space<vmem>>, vector<1x4x256xf32>
    %1 = vector.shape_cast %0 : vector<1x4x256xf32> to vector<4x256xf32>
    %c0_2 = arith.constant 0 : index
    %c0_3 = arith.constant 0 : index
    %c0_4 = arith.constant 0 : index
    %2 = vector.load %arg2[%c0_2, %c0_3, %c0_4] : memref<1x4x4xf32, #tpu.memory_space<vmem>>, vector<1x4x4xf32>
    %3 = vector.shape_cast %2 : vector<1x4x4xf32> to vector<4x4xf32>
    %4 = vector.extract_strided_slice %3 {offsets = [0, 0], sizes = [4, 1], strides = [1, 1]} : vector<4x4xf32> to vector<4x1xf32>
    %5 = vector.extract_strided_slice %3 {offsets = [0, 1], sizes = [4, 1], strides = [1, 1]} : vector<4x4xf32> to vector<4x1xf32>
    %6 = vector.extract_strided_slice %3 {offsets = [0, 2], sizes = [4, 1], strides = [1, 1]} : vector<4x4xf32> to vector<4x1xf32>
    %cst = arith.constant dense<0.000000e+00> : vector<4xf32>
    %7 = vector.multi_reduction <add>, %1, %cst [1] : vector<4x256xf32> to vector<4xf32>
    %8 = vector.shape_cast %7 : vector<4xf32> to vector<4x1xf32>
    %cst_5 = arith.constant 3.906250e-03 : f32
    %9 = vector.broadcast %cst_5 : f32 to vector<4x1xf32>
    %10 = arith.mulf %8, %9 : vector<4x1xf32>
    %11 = vector.broadcast %10 : vector<4x1xf32> to vector<4x256xf32>
    %12 = arith.subf %1, %11 : vector<4x256xf32>
    %13 = arith.mulf %12, %12 : vector<4x256xf32>
    %cst_6 = arith.constant dense<0.000000e+00> : vector<4xf32>
    %14 = vector.multi_reduction <add>, %13, %cst_6 [1] : vector<4x256xf32> to vector<4xf32>
    %15 = vector.shape_cast %14 : vector<4xf32> to vector<4x1xf32>
    %cst_7 = arith.constant 0.00392156886 : f32
    %16 = vector.broadcast %cst_7 : f32 to vector<4x1xf32>
    %17 = arith.mulf %15, %16 : vector<4x1xf32>
    %cst_8 = arith.constant dense<0.000000e+00> : vector<1xf32>
    %18 = vector.multi_reduction <add>, %10, %cst_8 [0] : vector<4x1xf32> to vector<1xf32>
    %19 = vector.shape_cast %18 : vector<1xf32> to vector<1x1xf32>
    %cst_9 = arith.constant 2.500000e-01 : f32
    %20 = vector.broadcast %cst_9 : f32 to vector<1x1xf32>
    %21 = arith.mulf %19, %20 : vector<1x1xf32>
    %22 = vector.broadcast %21 : vector<1x1xf32> to vector<4x1xf32>
    %23 = arith.subf %10, %22 : vector<4x1xf32>
    %cst_10 = arith.constant dense<0.000000e+00> : vector<1xf32>
    %24 = vector.multi_reduction <add>, %15, %cst_10 [0] : vector<4x1xf32> to vector<1xf32>
    %25 = vector.shape_cast %24 : vector<1xf32> to vector<1x1xf32>
    %26 = arith.mulf %23, %23 : vector<4x1xf32>
    %cst_11 = arith.constant dense<0.000000e+00> : vector<1xf32>
    %27 = vector.multi_reduction <add>, %26, %cst_11 [0] : vector<4x1xf32> to vector<1xf32>
    %28 = vector.shape_cast %27 : vector<1xf32> to vector<1x1xf32>
    %cst_12 = arith.constant 2.560000e+02 : f32
    %29 = vector.broadcast %cst_12 : f32 to vector<1x1xf32>
    %30 = arith.mulf %29, %28 : vector<1x1xf32>
    %31 = arith.addf %25, %30 : vector<1x1xf32>
    %cst_13 = arith.constant 9.77517105E-4 : f32
    %32 = vector.broadcast %cst_13 : f32 to vector<1x1xf32>
    %33 = arith.mulf %31, %32 : vector<1x1xf32>
    %cst_14 = arith.constant 9.99999974E-6 : f32
    %34 = vector.broadcast %cst_14 : f32 to vector<4x1xf32>
    %35 = arith.addf %17, %34 : vector<4x1xf32>
    %36 = math.rsqrt %35 : vector<4x1xf32>
    %cst_15 = arith.constant 9.99999974E-6 : f32
    %37 = vector.broadcast %cst_15 : f32 to vector<1x1xf32>
    %38 = arith.addf %33, %37 : vector<1x1xf32>
    %39 = math.rsqrt %38 : vector<1x1xf32>
    %40 = arith.mulf %4, %36 : vector<4x1xf32>
    %41 = vector.broadcast %39 : vector<1x1xf32> to vector<4x1xf32>
    %42 = arith.mulf %5, %41 : vector<4x1xf32>
    %43 = arith.addf %40, %42 : vector<4x1xf32>
    %44 = arith.mulf %4, %36 : vector<4x1xf32>
    %45 = arith.mulf %44, %10 : vector<4x1xf32>
    %46 = arith.subf %6, %45 : vector<4x1xf32>
    %47 = vector.broadcast %39 : vector<1x1xf32> to vector<4x1xf32>
    %48 = arith.mulf %5, %47 : vector<4x1xf32>
    %49 = vector.broadcast %21 : vector<1x1xf32> to vector<4x1xf32>
    %50 = arith.mulf %48, %49 : vector<4x1xf32>
    %51 = arith.subf %46, %50 : vector<4x1xf32>
    %52 = vector.broadcast %43 : vector<4x1xf32> to vector<4x256xf32>
    %53 = arith.mulf %1, %52 : vector<4x256xf32>
    %54 = vector.broadcast %51 : vector<4x1xf32> to vector<4x256xf32>
    %55 = arith.addf %53, %54 : vector<4x256xf32>
    %cst_16 = arith.constant 0.000000e+00 : f32
    %56 = vector.broadcast %cst_16 : f32 to vector<4x256xf32>
    %57 = arith.maximumf %55, %56 : vector<4x256xf32>
    %c0_17 = arith.constant 0 : index
    %c0_18 = arith.constant 0 : index
    %c0_19 = arith.constant 0 : index
    %58 = vector.load %arg3[%c0_17, %c0_18, %c0_19] : memref<1x4x256xf32, #tpu.memory_space<vmem>>, vector<1x4x256xf32>
    %59 = vector.shape_cast %58 : vector<1x4x256xf32> to vector<4x256xf32>
    %60 = vector.shape_cast %57 : vector<4x256xf32> to vector<1x4x256xf32>
    tpu.vector_store %arg3[%c0_17, %c0_18, %c0_19], %60 {strides = array<i32>} : memref<1x4x256xf32, #tpu.memory_space<vmem>>, vector<1x4x256xf32>,
    return
  }
  func.func @transform_0(%arg0: i32) -> (i32, i32, i32) {
    %c0_i32 = arith.constant 0 : i32
    %c0_i32_0 = arith.constant 0 : i32
    %c0_i32_1 = arith.constant 0 : i32
    return %arg0, %c0_i32, %c0_i32_0 : i32, i32, i32
  }
  func.func @transform_1(%arg0: i32) -> (i32, i32, i32) {
    %c0_i32 = arith.constant 0 : i32
    %c0_i32_0 = arith.constant 0 : i32
    %c0_i32_1 = arith.constant 0 : i32
    return %arg0, %c0_i32, %c0_i32_0 : i32, i32, i32
  }
  func.func @transform_2(%arg0: i32) -> (i32, i32, i32) {
    %c0_i32 = arith.constant 0 : i32
    %c0_i32_0 = arith.constant 0 : i32
    %c0_i32_1 = arith.constant 0 : i32
    return %arg0, %c0_i32, %c0_i32_0 : i32, i32, i32
  }
}

module attributes {stable_mosaic.version = 11 : i64} {
  func.func @kernel(%arg0: i32, %arg1: memref<1x4x256xf32, #tpu.memory_space<vmem>>, %arg2: memref<1x4x4xf32, #tpu.memory_space<vmem>>, %arg3: memref<1x4x256xf32, #tpu.memory_space<vmem>>, %arg4: memref<1x4x256xf32, #tpu.memory_space<vmem>>) attributes {dimension_semantics = [#tpu.dimension_semantics<parallel>], iteration_bounds = array<i64: 2>, scalar_prefetch = 0 : i64, scratch_operands = 0 : i64, tpu.core_type = #tpu.core_type<tc>, window_params = [{transform_indices = @transform_0, window_bounds = array<i64: 1, 4, 256>}, {transform_indices = @transform_1, window_bounds = array<i64: 1, 4, 4>}, {transform_indices = @transform_2, window_bounds = array<i64: 1, 4, 256>}, {transform_indices = @transform_3, window_bounds = array<i64: 1, 4, 256>}]} {
    %c0 = arith.constant 0 : index
    %c0_0 = arith.constant 0 : index
    %c0_1 = arith.constant 0 : index
    %0 = vector.load %arg1[%c0, %c0_0, %c0_1] : memref<1x4x256xf32, #tpu.memory_space<vmem>>, vector<1x4x256xf32>
    %1 = vector.shape_cast %0 : vector<1x4x256xf32> to vector<4x256xf32>
    %c0_2 = arith.constant 0 : index
    %c0_3 = arith.constant 0 : index
    %c0_4 = arith.constant 0 : index
    %2 = vector.load %arg2[%c0_2, %c0_3, %c0_4] : memref<1x4x4xf32, #tpu.memory_space<vmem>>, vector<1x4x4xf32>
    %3 = vector.shape_cast %2 : vector<1x4x4xf32> to vector<4x4xf32>
    %4 = vector.extract_strided_slice %3 {offsets = [0, 0], sizes = [4, 1], strides = [1, 1]} : vector<4x4xf32> to vector<4x1xf32>
    %5 = vector.extract_strided_slice %3 {offsets = [0, 1], sizes = [4, 1], strides = [1, 1]} : vector<4x4xf32> to vector<4x1xf32>
    %6 = vector.extract_strided_slice %3 {offsets = [0, 2], sizes = [4, 1], strides = [1, 1]} : vector<4x4xf32> to vector<4x1xf32>
    %cst = arith.constant dense<0.000000e+00> : vector<4xf32>
    %7 = vector.multi_reduction <add>, %1, %cst [1] : vector<4x256xf32> to vector<4xf32>
    %8 = vector.shape_cast %7 : vector<4xf32> to vector<4x1xf32>
    %cst_5 = arith.constant 3.906250e-03 : f32
    %9 = vector.broadcast %cst_5 : f32 to vector<4x1xf32>
    %10 = arith.mulf %8, %9 : vector<4x1xf32>
    %11 = vector.broadcast %10 : vector<4x1xf32> to vector<4x256xf32>
    %12 = arith.subf %1, %11 : vector<4x256xf32>
    %13 = arith.mulf %12, %12 : vector<4x256xf32>
    %cst_6 = arith.constant dense<0.000000e+00> : vector<4xf32>
    %14 = vector.multi_reduction <add>, %13, %cst_6 [1] : vector<4x256xf32> to vector<4xf32>
    %15 = vector.shape_cast %14 : vector<4xf32> to vector<4x1xf32>
    %cst_7 = arith.constant 0.00392156886 : f32
    %16 = vector.broadcast %cst_7 : f32 to vector<4x1xf32>
    %17 = arith.mulf %15, %16 : vector<4x1xf32>
    %cst_8 = arith.constant dense<0.000000e+00> : vector<1xf32>
    %18 = vector.multi_reduction <add>, %10, %cst_8 [0] : vector<4x1xf32> to vector<1xf32>
    %19 = vector.shape_cast %18 : vector<1xf32> to vector<1x1xf32>
    %cst_9 = arith.constant 2.500000e-01 : f32
    %20 = vector.broadcast %cst_9 : f32 to vector<1x1xf32>
    %21 = arith.mulf %19, %20 : vector<1x1xf32>
    %22 = vector.broadcast %21 : vector<1x1xf32> to vector<4x1xf32>
    %23 = arith.subf %10, %22 : vector<4x1xf32>
    %cst_10 = arith.constant dense<0.000000e+00> : vector<1xf32>
    %24 = vector.multi_reduction <add>, %15, %cst_10 [0] : vector<4x1xf32> to vector<1xf32>
    %25 = vector.shape_cast %24 : vector<1xf32> to vector<1x1xf32>
    %26 = arith.mulf %23, %23 : vector<4x1xf32>
    %cst_11 = arith.constant dense<0.000000e+00> : vector<1xf32>
    %27 = vector.multi_reduction <add>, %26, %cst_11 [0] : vector<4x1xf32> to vector<1xf32>
    %28 = vector.shape_cast %27 : vector<1xf32> to vector<1x1xf32>
    %cst_12 = arith.constant 2.560000e+02 : f32
    %29 = vector.broadcast %cst_12 : f32 to vector<1x1xf32>
    %30 = arith.mulf %29, %28 : vector<1x1xf32>
    %31 = arith.addf %25, %30 : vector<1x1xf32>
    %cst_13 = arith.constant 9.77517105E-4 : f32
    %32 = vector.broadcast %cst_13 : f32 to vector<1x1xf32>
    %33 = arith.mulf %31, %32 : vector<1x1xf32>
    %cst_14 = arith.constant 9.99999974E-6 : f32
    %34 = vector.broadcast %cst_14 : f32 to vector<4x1xf32>
    %35 = arith.addf %17, %34 : vector<4x1xf32>
    %36 = math.rsqrt %35 : vector<4x1xf32>
    %cst_15 = arith.constant 9.99999974E-6 : f32
    %37 = vector.broadcast %cst_15 : f32 to vector<1x1xf32>
    %38 = arith.addf %33, %37 : vector<1x1xf32>
    %39 = math.rsqrt %38 : vector<1x1xf32>
    %40 = arith.mulf %4, %36 : vector<4x1xf32>
    %41 = vector.broadcast %39 : vector<1x1xf32> to vector<4x1xf32>
    %42 = arith.mulf %5, %41 : vector<4x1xf32>
    %43 = arith.addf %40, %42 : vector<4x1xf32>
    %44 = arith.mulf %4, %36 : vector<4x1xf32>
    %45 = arith.mulf %44, %10 : vector<4x1xf32>
    %46 = arith.subf %6, %45 : vector<4x1xf32>
    %47 = vector.broadcast %39 : vector<1x1xf32> to vector<4x1xf32>
    %48 = arith.mulf %5, %47 : vector<4x1xf32>
    %49 = vector.broadcast %21 : vector<1x1xf32> to vector<4x1xf32>
    %50 = arith.mulf %48, %49 : vector<4x1xf32>
    %51 = arith.subf %46, %50 : vector<4x1xf32>
    %52 = vector.broadcast %43 : vector<4x1xf32> to vector<4x256xf32>
    %53 = arith.mulf %1, %52 : vector<4x256xf32>
    %54 = vector.broadcast %51 : vector<4x1xf32> to vector<4x256xf32>
    %55 = arith.addf %53, %54 : vector<4x256xf32>
    %c0_16 = arith.constant 0 : index
    %c0_17 = arith.constant 0 : index
    %c0_18 = arith.constant 0 : index
    %56 = vector.load %arg3[%c0_16, %c0_17, %c0_18] : memref<1x4x256xf32, #tpu.memory_space<vmem>>, vector<1x4x256xf32>
    %57 = vector.shape_cast %56 : vector<1x4x256xf32> to vector<4x256xf32>
    %58 = arith.addf %55, %57 : vector<4x256xf32>
    %c0_19 = arith.constant 0 : index
    %c0_20 = arith.constant 0 : index
    %c0_21 = arith.constant 0 : index
    %59 = vector.load %arg4[%c0_19, %c0_20, %c0_21] : memref<1x4x256xf32, #tpu.memory_space<vmem>>, vector<1x4x256xf32>
    %60 = vector.shape_cast %59 : vector<1x4x256xf32> to vector<4x256xf32>
    %61 = vector.shape_cast %58 : vector<4x256xf32> to vector<1x4x256xf32>
    tpu.vector_store %arg4[%c0_19, %c0_20, %c0_21], %61 {strides = array<i32>} : memref<1x4x256xf32, #tpu.memory_space<vmem>>, vector<1x4x256xf32>,
    return
  }
  func.func @transform_0(%arg0: i32) -> (i32, i32, i32) {
    %c0_i32 = arith.constant 0 : i32
    %c0_i32_0 = arith.constant 0 : i32
    %c0_i32_1 = arith.constant 0 : i32
    return %arg0, %c0_i32, %c0_i32_0 : i32, i32, i32
  }
  func.func @transform_1(%arg0: i32) -> (i32, i32, i32) {
    %c0_i32 = arith.constant 0 : i32
    %c0_i32_0 = arith.constant 0 : i32
    %c0_i32_1 = arith.constant 0 : i32
    return %arg0, %c0_i32, %c0_i32_0 : i32, i32, i32
  }
  func.func @transform_2(%arg0: i32) -> (i32, i32, i32) {
    %c0_i32 = arith.constant 0 : i32
    %c0_i32_0 = arith.constant 0 : i32
    %c0_i32_1 = arith.constant 0 : i32
    return %arg0, %c0_i32, %c0_i32_0 : i32, i32, i32
  }
  func.func @transform_3(%arg0: i32) -> (i32, i32, i32) {
    %c0_i32 = arith.constant 0 : i32
    %c0_i32_0 = arith.constant 0 : i32
    %c0_i32_1 = arith.constant 0 : i32
    return %arg0, %c0_i32, %c0_i32_0 : i32, i32, i32
  }
}

</mosaic_0001>

<bundles_post_ra>
// kernel: resnet_ada_iln_block.2
= control target key start
LH: loop header
LB: loop body
LE: loop exit
PB: predicated region body
PF: predicated region fallthrough
CT: control target
= control target key end

     0   :  { %s416_s9 = smov 0   ;;  %s467_s0 = inlined_call_operand.vmem [shape: f32[2,4,256], index: 0, kind: input, shape index: {}]   ;;  %s468_s1 = inlined_call_operand.vmem [shape: f32[2,4,4], index: 1, kind: input, shape index: {}]   ;;  %s469_s2 = inlined_call_operand.vmem [shape: f32[2,4,256], index: 2, kind: output, shape index: {}]  }
   0x1 LB: > { %s353_s10 = sadd.s32 4294967295, %s393_s9   ;;  %p357_p0 = scmp.ge.s32.totalorder %s393_s9, 1  ;;  %s393_s9 = sphi %s416_s9, %s12_s9  }
   0x2   : > { %p121_p1 = scmp.lt.s32.totalorder %s393_s9, 3 }
   0x4   : > { %p122_p2 = pnand %p357_p0, %p121_p1 }
   0x5   : > { %p147_p3 = scmp.lt.s32.totalorder (!%p122_p2), %s353_s10, 1  ;;  %s396_s19 = smov (!%p122_p2), 127  }
   0x6   : > { %125 = sbr.rel (%p122_p2) target bundleno = 565 (0x235), region = 28  ;;  %s397_s20 = smov (!%p122_p2), 1  }
   0x7   : > { %s398_s21 = smov (!%p122_p2), 2  }
   0xb   : > { %s471_s10 = smov (!%p147_p3, %s353_s10), 1  ;;  %vm169_vm0 = vcmask 1043456   ;;  %v395_v6 = vmov 839922192  }
   0xc   : > { %s365_s11 = sshll.u32 %s471_s10, 3  ;;  %v178_v7 = vunpack.c.l.s4 %v395_v6  ;;  %s360_s15 = sshll.u32 %s471_s10, 2  ;;  %v399_v6 = vmov 0  }
   0xd   : > { %s151_s14 = scalar_lea.vmem %s467_s0, %s365_s11  ;;  %s155_s18 = scalar_lea.vmem %s468_s1, %s360_s15  ;;  %381 = vset.pattern.permute.xlu2 %v399_v6 }
   0xe   : > { %v432_v0 = vld [vmem:[%s151_s14] sm:$0xff]  ;;  %v437_v8 = vunpack.c.0.s8 %v178_v7  ;;  %v400_v7 = vmov 2   ;;  %s160_s24 = scalar_lea.vmem %s469_s2, %s365_s11 }
   0xf   : > { %164 = vst [vmem:[#allocation1] ss:$2 sm:$0xff] %v432_v0  ;;  %v162_v62 = vld [vmem:[%s155_s18] sm:$0xf]  ;;  %382 = vset.pattern.permute.xlu0 %v400_v7 }
  0x16   : > { %v165_v1 = vld.sshfl [vmem:[#allocation1] sm:$0xff pattern:$0x75316420]  ;;  %v166_v2 = vld.sshfl [vmem:[#allocation1 + $0x8] sm:$0xff pattern:$0x75316420] }
  0x17   : > { %v170_v3 = vsel %vm169_vm0, %v165_v1, 0.0  ;;  %v171_v4 = vsel %vm169_vm0, %v166_v2, 0.0 }
  0x18   : > { %v172_v5 = vadd.f32 %v171_v4, %v170_v3 }
  0x1a   : > { %173 = vadd.xlane.f32.xlu0 %v172_v5 }
  0x8d   : > { %v174_v9 = vpop.xlane.xlu0 %173 }
  0x8e   : > { %v439_v10 = vmul.f32 0.00390625, %v174_v9 }
  0x90   : > { %v180_v11 = vperm.slane %v439_v10, %v437_v8  ;;  %v196_v19 = vsel %vm169_vm0, %v439_v10, 0.0 }
  0x91   : > { %v197_v20 = vrot.slane %v196_v19, 4 }
  0x92   : > { %v182_v12 = vsub.f32 %v432_v0, %v180_v11 }
  0x93   : > { %v198_v21 = vadd.f32 %v197_v20, %v196_v19 }
  0x94   : > { %v183_v13 = vmul.f32 %v182_v12, %v182_v12 }
  0x95   : > { %v199_v22 = vrot.slane %v198_v21, 2 }
  0x96   : > { %185 = vst [vmem:[#allocation1] ss:$2 sm:$0xff] %v183_v13 }
  0x97   : > { %v200_v23 = vadd.f32 %v199_v22, %v198_v21 }
  0x99   : > { %v201_v24 = vrot.slane %v200_v23, 1 }
  0x9b   : > { %v202_v25 = vadd.f32 %v201_v24, %v200_v23 }
  0x9d   : > { %v186_v14 = vld.sshfl [vmem:[#allocation1] sm:$0xff pattern:$0x75316420]  ;;  %v187_v15 = vld.sshfl [vmem:[#allocation1 + $0x8] sm:$0xff pattern:$0x75316420] }
  0x9e   : > { %v190_v16 = vsel %vm169_vm0, %v186_v14, 0.0  ;;  %v191_v17 = vsel %vm169_vm0, %v187_v15, 0.0  ;;  %v203_v26 = vmul.f32 0.25, %v202_v25 }
  0x9f   : > { %v192_v18 = vadd.f32 %v191_v17, %v190_v16 }
  0xa0   : > { %v204_v27 = vsub.f32 %v439_v10, %v203_v26 }
  0xa1   : > { %193 = vadd.xlane.f32.xlu0 %v192_v18 }
  0xa2   : > { %v212_v28 = vmul.f32 %v204_v27, %v204_v27 }
  0xa4   : > { %v213_v29 = vsel %vm169_vm0, %v212_v28, 0.0 }
  0xa5   : > { %v214_v30 = vrot.slane %v213_v29, 4 }
  0xa7   : > { %v215_v31 = vadd.f32 %v214_v30, %v213_v29 }
  0xa9   : > { %v216_v32 = vrot.slane %v215_v31, 2 }
  0xab   : > { %v217_v33 = vadd.f32 %v216_v32, %v215_v31 }
  0xad   : > { %v218_v38 = vrot.slane %v217_v33, 1 }
  0xaf   : > { %v219_v42 = vadd.f32 %v218_v38, %v217_v33 }
  0xb1   : > { %v220_v45 = vmul.f32 256.0, %v219_v42 }
 0x114   : > { %v194_v34 = vpop.xlane.xlu0 %193 }
 0x115   : > { %v205_v35 = vsel %vm169_vm0, %v194_v34, 0.0  ;;  %v195_v36 = vmul.f32 0.003921569, %v194_v34 }
 0x116   : > { %v206_v37 = vrot.slane %v205_v35, 4 }
 0x117   : > { %v223_v41 = vadd.f32 1e-05, %v195_v36 }
 0x118   : > { %v207_v39 = vadd.f32 %v206_v37, %v205_v35 }
 0x119   : > { %383 = vrsqrt.f32 %v223_v41  ;;  %vm230_vm5 = vweird.f32 %v223_v41 }
 0x11a   : > { %v208_v40 = vrot.slane %v207_v39, 2 }
 0x11c   : > { %v209_v43 = vadd.f32 %v208_v40, %v207_v39 }
 0x11e   : > { %v210_v44 = vrot.slane %v209_v43, 1 }
 0x11f   : > { %v384_v48 = vpop.eup %383 }
 0x120   : > { %v211_v46 = vadd.f32 %v210_v44, %v209_v43  ;;  %v225_v51 = vmul.f32 %v384_v48, %v223_v41  ;;  %vm231_vm2 = vweird.f32 %v384_v48 }
 0x121   : > { %vm232_vm6 = vmor %vm230_vm5, %vm231_vm2 }
 0x122   : > { %v221_v47 = vadd.f32 %v220_v45, %v211_v46  ;;  %v226_v52 = vmul.f32 %v384_v48, %v225_v51 }
 0x124   : > { %v222_v49 = vmul.f32 0.0009775171, %v221_v47  ;;  %v227_v54 = vmul.f32 0.5, %v226_v52 }
 0x126   : > { %v234_v50 = vadd.f32 1e-05, %v222_v49  ;;  %v228_v57 = vsub.f32 1.5, %v227_v54 }
 0x128   : > { %385 = vrsqrt.f32 %v234_v50  ;;  %vm241_vm3 = vweird.f32 %v234_v50  ;;  %v229_v61 = vmul.f32 %v384_v48, %v228_v57 }
 0x12a   : > { %v233_v2 = vsel %vm232_vm6, %v384_v48, %v229_v61 }
 0x12b   : > { %v245_v4 = vmul.f32 %v233_v2, %v162_v62 }
 0x12d   : > { %v252_v5 = vmul.f32 %v245_v4, %v439_v10 }
 0x12e   : > { %v386_v53 = vpop.eup %385 }
 0x12f   : > { %v236_v55 = vmul.f32 %v386_v53, %v234_v50  ;;  %vm242_vm1 = vweird.f32 %v386_v53 }
 0x130   : > { %vm243_vm4 = vmor %vm241_vm3, %vm242_vm1 }
 0x131   : > { %v237_v56 = vmul.f32 %v386_v53, %v236_v55 }
 0x133   : > { %v238_v58 = vmul.f32 0.5, %v237_v56 }
 0x135   : > { %v239_v59 = vsub.f32 1.5, %v238_v58 }
 0x137   : > { %v240_v60 = vmul.f32 %v386_v53, %v239_v59 }
 0x139   : > { %v244_v63 = vsel %vm243_vm4, %v386_v53, %v240_v60 }
 0x13a   : > { %v246_v1 = vmul.f32 %v244_v63, %v162_v62 }
 0x13c   : > { %248 = vrot.lane.b32.xlu1 %v246_v1, %s396_s19  ;;  %v258_v3 = vmul.f32 %v246_v1, %v203_v26 }
 0x13e   : > { %260 = vrot.lane.b32.xlu2 %v258_v3, %s397_s20 }
 0x144   : > { %254 = vrot.lane.b32.xlu1 %v252_v5, %s398_s21 }
 0x198   : > { %v261_v14 = vpop.permute.xlu2 %260 }
 0x1ae   : > { %v249_v9 = vpop.permute.xlu1 %248 }
 0x1af   : > { %v251_v11 = vadd.f32 %v249_v9, %v245_v4 }
 0x1b1   : > { %266 = vperm.xlu2 %381, %v251_v11  }
 0x1b6   : > { %v255_v12 = vpop.permute.xlu1 %254 }
 0x1b7   : > { %v257_v13 = vsub.f32 %v162_v62, %v255_v12 }
 0x1b9   : > { %v263_v15 = vsub.f32 %v257_v13, %v261_v14 }
 0x1bb   : > { %276 = vperm.xlu0 %382, %v263_v15  }
 0x20b   : > { %v267_v16 = vpop.permute.xlu2 %266 }
 0x20c   : > { %v271_v17 = vperm.slane %v267_v16, %v437_v8 }
 0x20e   : > { %v273_v10 = vmul.f32 %v271_v17, %v432_v0 }
 0x22d   : > { %v277_v18 = vpop.permute.xlu0 %276 }
 0x22e   : > { %v281_v19 = vperm.slane %v277_v18, %v437_v8 }
 0x230   : > { %v283_v20 = vadd.f32 %v281_v19, %v273_v10 }
 0x232   : > { %v284_v21 = vmax.f32 %v283_v20, 0.0 }
 0x234   : > { %285 = vst [vmem:[%s160_s24] sm:$0xff] %v284_v21 }
 0x235 PF: > { %s12_s9 = sadd.s32 1, %s393_s9  }
 0x236   : > { %p9_p4 = scmp.ge.s32.totalorder %s12_s9, 4  }
 0x238   :  { %11 = sbr.rel (!%p9_p4) target bundleno = 1 (0x1), region = 61 }

// kernel: resnet_ada_iln_block.3
= control target key start
LH: loop header
LB: loop body
LE: loop exit
PB: predicated region body
PF: predicated region fallthrough
CT: control target
= control target key end

     0   :  { %s484_s12 = smov 0   ;;  %s539_s0 = inlined_call_operand.vmem [shape: f32[2,4,256], index: 0, kind: input, shape index: {}]   ;;  %s540_s1 = inlined_call_operand.vmem [shape: f32[2,4,4], index: 1, kind: input, shape index: {}]   ;;  %s541_s2 = inlined_call_operand.vmem [shape: f32[2,4,256], index: 2, kind: input, shape index: {}]   ;;  %s542_s3 = inlined_call_operand.vmem [shape: f32[2,4,256], index: 3, kind: output, shape index: {}]  }
   0x1 LB: > { %s413_s13 = sadd.s32 4294967295, %s456_s12   ;;  %p417_p0 = scmp.ge.s32.totalorder %s456_s12, 1  ;;  %s456_s12 = sphi %s484_s12, %s13_s12  }
   0x2   : > { %p156_p1 = scmp.lt.s32.totalorder %s456_s12, 3 }
   0x4   : > { %p157_p2 = pnand %p417_p0, %p156_p1 }
   0x5   : > { %p189_p3 = scmp.lt.s32.totalorder (!%p157_p2), %s413_s13, 1  ;;  %s459_s22 = smov (!%p157_p2), 127  }
   0x6   : > { %160 = sbr.rel (%p157_p2) target bundleno = 565 (0x235), region = 32  ;;  %s460_s23 = smov (!%p157_p2), 1  }
   0x7   : > { %s461_s24 = smov (!%p157_p2), 2  }
   0xb   : > { %s544_s13 = smov (!%p189_p3, %s413_s13), 1  ;;  %vm216_vm0 = vcmask 1043456   ;;  %v458_v6 = vmov 839922192  }
   0xc   : > { %s495_s14 = sshll.u32 %s544_s13, 3  ;;  %v225_v7 = vunpack.c.l.s4 %v458_v6  ;;  %s420_s18 = sshll.u32 %s544_s13, 2  ;;  %v462_v6 = vmov 0  }
   0xd   : > { %s193_s17 = scalar_lea.vmem %s539_s0, %s495_s14  ;;  %s197_s21 = scalar_lea.vmem %s540_s1, %s420_s18  ;;  %444 = vset.pattern.permute.xlu2 %v462_v6 }
   0xe   : > { %v501_v0 = vld [vmem:[%s193_s17] sm:$0xff]  ;;  %v506_v8 = vunpack.c.0.s8 %v225_v7  ;;  %v463_v7 = vmov 2   ;;  %s202_s27 = scalar_lea.vmem %s541_s2, %s495_s14  ;;  %s207_s30 = scalar_lea.vmem %s542_s3, %s495_s14 }
   0xf   : > { %211 = vst [vmem:[#allocation1] ss:$2 sm:$0xff] %v501_v0  ;;  %v209_v62 = vld [vmem:[%s197_s21] sm:$0xf]  ;;  %445 = vset.pattern.permute.xlu0 %v463_v7 }
  0x16   : > { %v212_v1 = vld.sshfl [vmem:[#allocation1] sm:$0xff pattern:$0x75316420]  ;;  %v213_v2 = vld.sshfl [vmem:[#allocation1 + $0x8] sm:$0xff pattern:$0x75316420] }
  0x17   : > { %v217_v3 = vsel %vm216_vm0, %v212_v1, 0.0  ;;  %v218_v4 = vsel %vm216_vm0, %v213_v2, 0.0 }
  0x18   : > { %v219_v5 = vadd.f32 %v218_v4, %v217_v3 }
  0x1a   : > { %220 = vadd.xlane.f32.xlu0 %v219_v5 }
  0x8d   : > { %v221_v9 = vpop.xlane.xlu0 %220 }
  0x8e   : > { %v508_v10 = vmul.f32 0.00390625, %v221_v9 }
  0x90   : > { %v227_v11 = vperm.slane %v508_v10, %v506_v8  ;;  %v243_v19 = vsel %vm216_vm0, %v508_v10, 0.0 }
  0x91   : > { %v244_v20 = vrot.slane %v243_v19, 4 }
  0x92   : > { %v229_v12 = vsub.f32 %v501_v0, %v227_v11 }
  0x93   : > { %v245_v21 = vadd.f32 %v244_v20, %v243_v19  ;;  %v331_v20 = vld [vmem:[%s202_s27] sm:$0xff] }
  0x94   : > { %v230_v13 = vmul.f32 %v229_v12, %v229_v12 }
  0x95   : > { %v246_v22 = vrot.slane %v245_v21, 2 }
  0x96   : > { %232 = vst [vmem:[#allocation1] ss:$2 sm:$0xff] %v230_v13 }
  0x97   : > { %v247_v23 = vadd.f32 %v246_v22, %v245_v21 }
  0x99   : > { %v248_v24 = vrot.slane %v247_v23, 1 }
  0x9b   : > { %v249_v25 = vadd.f32 %v248_v24, %v247_v23 }
  0x9d   : > { %v233_v14 = vld.sshfl [vmem:[#allocation1] sm:$0xff pattern:$0x75316420]  ;;  %v234_v15 = vld.sshfl [vmem:[#allocation1 + $0x8] sm:$0xff pattern:$0x75316420] }
  0x9e   : > { %v237_v16 = vsel %vm216_vm0, %v233_v14, 0.0  ;;  %v238_v17 = vsel %vm216_vm0, %v234_v15, 0.0  ;;  %v250_v26 = vmul.f32 0.25, %v249_v25 }
  0x9f   : > { %v239_v18 = vadd.f32 %v238_v17, %v237_v16 }
  0xa0   : > { %v251_v27 = vsub.f32 %v508_v10, %v250_v26 }
  0xa1   : > { %240 = vadd.xlane.f32.xlu0 %v239_v18 }
  0xa2   : > { %v259_v28 = vmul.f32 %v251_v27, %v251_v27 }
  0xa4   : > { %v260_v29 = vsel %vm216_vm0, %v259_v28, 0.0 }
  0xa5   : > { %v261_v30 = vrot.slane %v260_v29, 4 }
  0xa7   : > { %v262_v31 = vadd.f32 %v261_v30, %v260_v29 }
  0xa9   : > { %v263_v32 = vrot.slane %v262_v31, 2 }
  0xab   : > { %v264_v33 = vadd.f32 %v263_v32, %v262_v31 }
  0xad   : > { %v265_v38 = vrot.slane %v264_v33, 1 }
  0xaf   : > { %v266_v42 = vadd.f32 %v265_v38, %v264_v33 }
  0xb1   : > { %v267_v45 = vmul.f32 256.0, %v266_v42 }
 0x114   : > { %v241_v34 = vpop.xlane.xlu0 %240 }
 0x115   : > { %v252_v35 = vsel %vm216_vm0, %v241_v34, 0.0  ;;  %v242_v36 = vmul.f32 0.003921569, %v241_v34 }
 0x116   : > { %v253_v37 = vrot.slane %v252_v35, 4 }
 0x117   : > { %v270_v41 = vadd.f32 1e-05, %v242_v36 }
 0x118   : > { %v254_v39 = vadd.f32 %v253_v37, %v252_v35 }
 0x119   : > { %446 = vrsqrt.f32 %v270_v41  ;;  %vm277_vm5 = vweird.f32 %v270_v41 }
 0x11a   : > { %v255_v40 = vrot.slane %v254_v39, 2 }
 0x11c   : > { %v256_v43 = vadd.f32 %v255_v40, %v254_v39 }
 0x11e   : > { %v257_v44 = vrot.slane %v256_v43, 1 }
 0x11f   : > { %v447_v48 = vpop.eup %446 }
 0x120   : > { %v258_v46 = vadd.f32 %v257_v44, %v256_v43  ;;  %v272_v51 = vmul.f32 %v447_v48, %v270_v41  ;;  %vm278_vm2 = vweird.f32 %v447_v48 }
 0x121   : > { %vm279_vm6 = vmor %vm277_vm5, %vm278_vm2 }
 0x122   : > { %v268_v47 = vadd.f32 %v267_v45, %v258_v46  ;;  %v273_v52 = vmul.f32 %v447_v48, %v272_v51 }
 0x124   : > { %v269_v49 = vmul.f32 0.0009775171, %v268_v47  ;;  %v274_v54 = vmul.f32 0.5, %v273_v52 }
 0x126   : > { %v281_v50 = vadd.f32 1e-05, %v269_v49  ;;  %v275_v57 = vsub.f32 1.5, %v274_v54 }
 0x128   : > { %448 = vrsqrt.f32 %v281_v50  ;;  %vm288_vm3 = vweird.f32 %v281_v50  ;;  %v276_v61 = vmul.f32 %v447_v48, %v275_v57 }
 0x12a   : > { %v280_v2 = vsel %vm279_vm6, %v447_v48, %v276_v61 }
 0x12b   : > { %v292_v4 = vmul.f32 %v280_v2, %v209_v62 }
 0x12d   : > { %v299_v5 = vmul.f32 %v292_v4, %v508_v10 }
 0x12e   : > { %v449_v53 = vpop.eup %448 }
 0x12f   : > { %v283_v55 = vmul.f32 %v449_v53, %v281_v50  ;;  %vm289_vm1 = vweird.f32 %v449_v53 }
 0x130   : > { %vm290_vm4 = vmor %vm288_vm3, %vm289_vm1 }
 0x131   : > { %v284_v56 = vmul.f32 %v449_v53, %v283_v55 }
 0x133   : > { %v285_v58 = vmul.f32 0.5, %v284_v56 }
 0x135   : > { %v286_v59 = vsub.f32 1.5, %v285_v58 }
 0x137   : > { %v287_v60 = vmul.f32 %v449_v53, %v286_v59 }
 0x139   : > { %v291_v63 = vsel %vm290_vm4, %v449_v53, %v287_v60 }
 0x13a   : > { %v293_v1 = vmul.f32 %v291_v63, %v209_v62 }
 0x13c   : > { %295 = vrot.lane.b32.xlu1 %v293_v1, %s459_s22  ;;  %v305_v3 = vmul.f32 %v293_v1, %v250_v26 }
 0x13e   : > { %307 = vrot.lane.b32.xlu2 %v305_v3, %s460_s23 }
 0x144   : > { %301 = vrot.lane.b32.xlu1 %v299_v5, %s461_s24 }
 0x198   : > { %v308_v14 = vpop.permute.xlu2 %307 }
 0x1ae   : > { %v296_v9 = vpop.permute.xlu1 %295 }
 0x1af   : > { %v298_v11 = vadd.f32 %v296_v9, %v292_v4 }
 0x1b1   : > { %313 = vperm.xlu2 %444, %v298_v11  }
 0x1b6   : > { %v302_v12 = vpop.permute.xlu1 %301 }
 0x1b7   : > { %v304_v13 = vsub.f32 %v209_v62, %v302_v12 }
 0x1b9   : > { %v310_v15 = vsub.f32 %v304_v13, %v308_v14 }
 0x1bb   : > { %323 = vperm.xlu0 %445, %v310_v15  }
 0x20b   : > { %v314_v16 = vpop.permute.xlu2 %313 }
 0x20c   : > { %v318_v17 = vperm.slane %v314_v16, %v506_v8 }
 0x20e   : > { %v320_v18 = vmul.f32 %v318_v17, %v501_v0 }
 0x22d   : > { %v324_v10 = vpop.permute.xlu0 %323 }
 0x22e   : > { %v328_v19 = vperm.slane %v324_v10, %v506_v8 }
 0x230   : > { %v330_v21 = vadd.f32 %v328_v19, %v320_v18 }
 0x232   : > { %v332_v22 = vadd.f32 %v331_v20, %v330_v21 }
 0x234   : > { %333 = vst [vmem:[%s207_s30] sm:$0xff] %v332_v22 }
 0x235 PF: > { %s13_s12 = sadd.s32 1, %s456_s12  }
 0x236   : > { %p10_p4 = scmp.ge.s32.totalorder %s13_s12, 4  }
 0x238   :  { %12 = sbr.rel (!%p10_p4) target bundleno = 1 (0x1), region = 68 }

</bundles_post_ra>
